<compile_context>
chip_gen: v5e
topology: v5e:2x2
jax: 0.10.0
libtpu: 0.0.40
codegen_flags: <defaults>
</compile_context>

<pallas_src>
import functools

import jax
import jax.numpy as jnp
from jax.experimental import pallas as pl
from jax.experimental.pallas import tpu as pltpu

IN_FEATURES = 2048
LANE = 128
SUBLANE = 8


def _round_up(n: int, m: int) -> int:
    return ((n + m - 1) // m) * m


def _classifier_kernel(seed_ref, x_ref, w_ref, b_ref, o_ref, *,
                       dropout_rate: float, training: bool):
    """Dropout (inverted) + dense layer for one batch tile.

    seed_ref : SMEM (1,) int32          dropout PRNG seed (scalar prefetch)
    x_ref    : VMEM (TB, 2048)          flattened activations (native dtype)
    w_ref    : VMEM (2048, C_pad)       linear weight, pre-transposed + padded (resident)
    b_ref    : VMEM (1, C_pad) f32      linear bias, padded (resident)
    o_ref    : VMEM (TB, C_pad)         output logits
    """
    x = x_ref[...]

    if training and dropout_rate > 0.0:
        keep_prob = 1.0 - float(dropout_rate)
        # Unsigned threshold, clamped so keep_prob ~ 1.0 cannot wrap to 0.
        thr_u = min(int(keep_prob * (1 << 32)), (1 << 32) - 1)
        thr_signed = jnp.int32(thr_u - (1 << 31))

        tb, feat = x.shape
        rows = jax.lax.broadcasted_iota(jnp.int32, (tb, feat), 0)
        cols = jax.lax.broadcasted_iota(jnp.int32, (tb, feat), 1)
        row0 = pl.program_id(0) * tb
        # Global element index (wraps in int32 — fine for hashing).
        h = (rows + row0) * jnp.int32(feat) + cols + seed_ref[0]

        # splitmix32-style mixing, all in int32 (logical shifts emulated via mask).
        def _lsr(v, k):  # logical shift right for int32
            return jnp.right_shift(v, k) & jnp.int32((1 << (32 - k)) - 1)

        h = (h ^ _lsr(h, 16)) * jnp.int32(0x7FEB352D)
        h = (h ^ _lsr(h, 15)) * jnp.int32(0x846CA68B - (1 << 32))
        h = h ^ _lsr(h, 16)

        # Unsigned compare (u < thr_u) via sign-bit flip + signed compare.
        keep = (h ^ jnp.int32(-(1 << 31))) < thr_signed

        xf = x.astype(jnp.float32)
        xf = jnp.where(keep, xf * jnp.float32(1.0 / keep_prob), 0.0)
        x = xf.astype(x_ref.dtype)

    y = jnp.dot(x, w_ref[...], preferred_element_type=jnp.float32)
    o_ref[...] = (y + b_ref[...].astype(jnp.float32)).astype(o_ref.dtype)


def prepare_classifier_params(weight, bias):
    """One-time prep: torch-layout (C, 2048) weight -> (2048, C_pad), bias -> (1, C_pad)."""
    num_class, in_feat = weight.shape
    assert in_feat == IN_FEATURES
    c_pad = _round_up(max(num_class, LANE), LANE)
    w_t = jnp.transpose(weight)                                   # (2048, C)
    w_t = jnp.pad(w_t, ((0, 0), (0, c_pad - num_class)))
    b2 = jnp.pad(bias.astype(jnp.float32), (0, c_pad - num_class)).reshape(1, c_pad)
    return w_t, b2, num_class


def classifier_forward(x, w_t_pad, b_pad, num_class, seed=0, *,
                       dropout_rate=0.5, training=False, tile_b=256):
    """Forward pass of Classifier.

    x        : (B, ...) with prod(...) == 2048  (e.g. (B, 2048, 1, 1) pooled ResNet feats)
    w_t_pad  : (2048, C_pad)  from prepare_classifier_params
    b_pad    : (1, C_pad) f32 from prepare_classifier_params
    """
    B = x.shape[0]
    x2 = x.reshape(B, -1)                               # x.view(B, -1), native dtype
    assert x2.shape[1] == IN_FEATURES, "Classifier expects 2048 input features"
    c_pad = w_t_pad.shape[1]

    # Batch tiling: TB multiple of 8 (sublane), pad B up to a multiple of TB.
    tb = min(int(tile_b), _round_up(B, SUBLANE))
    tb = _round_up(tb, SUBLANE)
    b_padded = _round_up(B, tb)
    if b_padded != B:
        x2 = jnp.pad(x2, ((0, b_padded - B), (0, 0)))
    n_tiles = b_padded // tb

    seed_arr = jnp.array([seed], dtype=jnp.int32)
    out_dtype = x2.dtype
    elt = jnp.dtype(out_dtype).itemsize

    kernel = functools.partial(_classifier_kernel,
                               dropout_rate=float(dropout_rate),
                               training=bool(training))

    grid_spec = pltpu.PrefetchScalarGridSpec(
        num_scalar_prefetch=1,
        grid=(n_tiles,),
        in_specs=[
            pl.BlockSpec((tb, IN_FEATURES), lambda i, seed: (i, 0)),      # x tile
            pl.BlockSpec((IN_FEATURES, c_pad), lambda i, seed: (0, 0)),   # weight (resident)
            pl.BlockSpec((1, c_pad), lambda i, seed: (0, 0)),             # bias   (resident)
        ],
        out_specs=pl.BlockSpec((tb, c_pad), lambda i, seed: (i, 0)),
    )

    cost = pl.CostEstimate(
        flops=2 * b_padded * IN_FEATURES * c_pad,
        transcendentals=0,
        bytes_accessed=(b_padded * IN_FEATURES * elt
                        + IN_FEATURES * c_pad * w_t_pad.dtype.itemsize
                        + c_pad * 4
                        + b_padded * c_pad * elt),
    )

    out = pl.pallas_call(
        kernel,
        out_shape=jax.ShapeDtypeStruct((b_padded, c_pad), out_dtype),
        grid_spec=grid_spec,
        compiler_params=pltpu.CompilerParams(
            dimension_semantics=("parallel",),
            vmem_limit_bytes=64 * 1024 * 1024,
        ),
        cost_estimate=cost,
    )(seed_arr, x2, w_t_pad, b_pad)

    return out[:B, :num_class]


def init_classifier_params(key, num_class, in_features=IN_FEATURES):
    # Mimics torch.nn.Linear default init: U(-1/sqrt(fan_in), 1/sqrt(fan_in))
    kw, kb = jax.random.split(key)
    bound = 1.0 / jnp.sqrt(jnp.float32(in_features))
    weight = jax.random.uniform(kw, (num_class, in_features),
                                minval=-bound, maxval=bound, dtype=jnp.float32)
    bias = jax.random.uniform(kb, (num_class,),
                              minval=-bound, maxval=bound, dtype=jnp.float32)
    return weight, bias


if __name__ == "__main__":
    key = jax.random.PRNGKey(0)
    k_x, k_params = jax.random.split(key)

    batch = 2
    num_class = 8
    # Pooled ResNet feature map: (B, 2048, 1, 1) -> view(B, -1) -> (B, 2048)
    x = jax.random.normal(k_x, (batch, IN_FEATURES, 1, 1), dtype=jnp.float32)
    weight, bias = init_classifier_params(k_params, num_class)

    # One-time parameter prep (transpose + lane padding) outside the per-call path.
    w_t_pad, b_pad, nc = prepare_classifier_params(weight, bias)

    # Eval-mode pass (dropout = identity); check against a pure-JAX reference.
    out_eval = classifier_forward(x, w_t_pad, b_pad, nc, training=False)
    out_eval = jax.block_until_ready(out_eval)
    ref = x.reshape(batch, -1) @ weight.T + bias
    assert out_eval.shape == (batch, num_class)
    assert jnp.allclose(out_eval, ref, atol=1e-4, rtol=1e-4), "eval-mode mismatch"

    # Training-mode pass (in-kernel hash-based inverted dropout).
    out_train = classifier_forward(x, w_t_pad, b_pad, nc, seed=1234,
                                   dropout_rate=0.5, training=True)
    out_train = jax.block_until_ready(out_train)
    assert out_train.shape == (batch, num_class)
    assert bool(jnp.all(jnp.isfinite(out_train)))

    print("KERNEL_OK")
</pallas_src>

<mosaic_0001>
module attributes {stable_mosaic.version = 11 : i64} {
  func.func @_classifier_kernel(%arg0: i32, %arg1: memref<1xi32, #tpu.memory_space<smem>>, %arg2: memref<8x2048xf32, #tpu.memory_space<vmem>>, %arg3: memref<2048x128xf32, #tpu.memory_space<vmem>>, %arg4: memref<1x128xf32, #tpu.memory_space<vmem>>, %arg5: memref<8x128xf32, #tpu.memory_space<vmem>>) attributes {dimension_semantics = [#tpu.dimension_semantics<parallel>], iteration_bounds = array<i64: 1>, scalar_prefetch = 1 : i64, scratch_operands = 0 : i64, tpu.core_type = #tpu.core_type<tc>, window_params = [{transform_indices = @transform_0, window_bounds = array<i64: 8, 2048>}, {pipeline_mode = #tpu.pipeline_mode<synchronous>, transform_indices = @transform_1, window_bounds = array<i64: 2048, 128>}, {pipeline_mode = #tpu.pipeline_mode<synchronous>, transform_indices = @transform_2, window_bounds = array<i64: 1, 128>}, {transform_indices = @transform_3, window_bounds = array<i64: 8, 128>}]} {
    %c0 = arith.constant 0 : index
    %c0_0 = arith.constant 0 : index
    %0 = vector.load %arg2[%c0, %c0_0] : memref<8x2048xf32, #tpu.memory_space<vmem>>, vector<8x2048xf32>
    %c0_1 = arith.constant 0 : index
    %c0_2 = arith.constant 0 : index
    %1 = vector.load %arg3[%c0_1, %c0_2] : memref<2048x128xf32, #tpu.memory_space<vmem>>, vector<2048x128xf32>
    %cst = arith.constant dense<0.000000e+00> : vector<8x128xf32>
    %2 = tpu.matmul %0, %1, %cst {dimension_numbers = #tpu.dot_dimension_numbers<[1], [0], [0], [1], [0, 0, 1, 1], [], []>} : vector<8x2048xf32>, vector<2048x128xf32>, vector<8x128xf32> -> vector<8x128xf32>
    %c0_3 = arith.constant 0 : index
    %c0_4 = arith.constant 0 : index
    %3 = vector.load %arg4[%c0_3, %c0_4] : memref<1x128xf32, #tpu.memory_space<vmem>>, vector<1x128xf32>
    %4 = vector.broadcast %3 : vector<1x128xf32> to vector<8x128xf32>
    %5 = arith.addf %2, %4 : vector<8x128xf32>
    %c0_5 = arith.constant 0 : index
    %c0_6 = arith.constant 0 : index
    %6 = vector.load %arg5[%c0_5, %c0_6] : memref<8x128xf32, #tpu.memory_space<vmem>>, vector<8x128xf32>
    tpu.vector_store %arg5[%c0_5, %c0_6], %5 {strides = array<i32>} : memref<8x128xf32, #tpu.memory_space<vmem>>, vector<8x128xf32>,
    return
  }
  func.func @transform_0(%arg0: i32, %arg1: memref<1xi32, #tpu.memory_space<smem>>) -> (i32, i32) {
    %c0_i32 = arith.constant 0 : i32
    %c0_i32_0 = arith.constant 0 : i32
    return %arg0, %c0_i32 : i32, i32
  }
  func.func @transform_1(%arg0: i32, %arg1: memref<1xi32, #tpu.memory_space<smem>>) -> (i32, i32) {
    %c0_i32 = arith.constant 0 : i32
    %c0_i32_0 = arith.constant 0 : i32
    %c0_i32_1 = arith.constant 0 : i32
    return %c0_i32, %c0_i32_0 : i32, i32
  }
  func.func @transform_2(%arg0: i32, %arg1: memref<1xi32, #tpu.memory_space<smem>>) -> (i32, i32) {
    %c0_i32 = arith.constant 0 : i32
    %c0_i32_0 = arith.constant 0 : i32
    %c0_i32_1 = arith.constant 0 : i32
    return %c0_i32, %c0_i32_0 : i32, i32
  }
  func.func @transform_3(%arg0: i32, %arg1: memref<1xi32, #tpu.memory_space<smem>>) -> (i32, i32) {
    %c0_i32 = arith.constant 0 : i32
    %c0_i32_0 = arith.constant 0 : i32
    return %arg0, %c0_i32 : i32, i32
  }
}

</mosaic_0001>

<bundles_post_ra>
// kernel: tpu_custom_call.1
= control target key start
LH: loop header
LB: loop body
LE: loop exit
PB: predicated region body
PF: predicated region fallthrough
CT: control target
= control target key end

     0   :  { %10 = vsyncpa [#allocation5], 0  ;;  %s788_s0 = inlined_call_operand.<no memory space> [shape: s32[1], index: 0, kind: input, shape index: {}]   ;;  %s789_s1 = inlined_call_operand.hbm [shape: f32[8,2048], index: 1, kind: input, shape index: {}]   ;;  %s790_s2 = inlined_call_operand.hbm [shape: f32[2048,128], index: 2, kind: input, shape index: {}]   ;;  %s791_s3 = inlined_call_operand.vmem [shape: f32[1,128], index: 3, kind: input, shape index: {}]   ;;  %s792_s4 = inlined_call_operand.hbm [shape: f32[8,128], index: 4, kind: output, shape index: {}]  }
   0x1   :  { %11 = vsyncpa [#allocation8], 0 }
   0x2   :  { %12 = vsyncpa [#allocation6], 0  ;;  %s18_s17 = sshll.u32 %s789_s1, 4  ;;  %s746_s0 = smov [#allocation4]   ;;  %s19_s17 = int_to_ptr.hbm [resolvable:$true] %s18_s17 }
   0x3   :  { %s20_s18 = sshll.u32 %s746_s0, 4  ;;  %s28_s21 = sshll.u32 %s790_s2, 4  ;;  %s21_s18 = int_to_ptr.vmem [resolvable:$true] %s20_s18  ;;  %s29_s21 = int_to_ptr.hbm [resolvable:$true] %s28_s21 }
   0x4   :  { %23 = dma.hbm_to_vmem [thread:$0]  %s19_s17, 2048, %s21_s18, [#allocation5]  }
   0x5   :  { %s747_s22 = smov [#allocation7]   ;;  %s748_s24 = smov 128  }
   0x6   :  { %s30_s23 = sshll.u32 %s747_s22, 4  ;;  %s749_s25 = smov 8   ;;  %s31_s23 = int_to_ptr.vmem [resolvable:$true] %s30_s23 }
   0x7   :  { %36 = dma.hbm_to_vmem [thread:$0]  %s29_s21, 32768, %s31_s23, [#allocation8], %s748_s24, %s748_s24, %s749_s25  }
   0x8   :  { %740 = dma.done.wait [#allocation5], 2048  }
   0x9   :  { %741 = vsyncadd [#allocation5], 4294965248 }
   0xa   :  { %742 = dma.done.wait [#allocation8], 32768  }
   0xb   :  { %743 = vsyncadd [#allocation8], 4294934528  ;;  %v78_v0 = vld [vmem:[#allocation7 + $0x78] sm:$0xff]  ;;  %v77_v2 = vld [vmem:[#allocation7 + $0x70] sm:$0xff]  ;;  %s651_s29 = sshll.u32 %s792_s4, 4  ;;  %s652_s29 = int_to_ptr.hbm [resolvable:$true] %s651_s29 }
   0xc   :  { %v110_v1 = vld [vmem:[#allocation7 + $0x178] sm:$0xff]  ;;  %323 = vmatpush.msra.mxu0 %v78_v0  ;;  %v109_v4 = vld [vmem:[#allocation7 + $0x170] sm:$0xff]  ;;  %v76_v6 = vld [vmem:[#allocation7 + $0x68] sm:$0xff] }
   0xd   :  { %363 = vmatpush.msra.mxu2 %v110_v1  ;;  %v94_v3 = vld [vmem:[#allocation7 + $0xf8] sm:$0xff]  ;;  %v93_v7 = vld [vmem:[#allocation7 + $0xf0] sm:$0xff]  ;;  %v108_v8 = vld [vmem:[#allocation7 + $0x168] sm:$0xff] }
   0xe   :  { %v126_v5 = vld [vmem:[#allocation7 + $0x1f8] sm:$0xff]  ;;  %343 = vmatpush.msra.mxu1 %v94_v3  ;;  %324 = vmatpush.msra.mxu0 %v77_v2  ;;  %v125_v9 = vld [vmem:[#allocation7 + $0x1f0] sm:$0xff]  ;;  %v92_v10 = vld [vmem:[#allocation7 + $0xe8] sm:$0xff] }
   0xf   :  { %383 = vmatpush.msra.mxu3 %v126_v5  ;;  %364 = vmatpush.msra.mxu2 %v109_v4  ;;  %v75_v11 = vld [vmem:[#allocation7 + $0x60] sm:$0xff]  ;;  %v124_v13 = vld [vmem:[#allocation7 + $0x1e8] sm:$0xff]  ;;  %v74_v16 = vld [vmem:[#allocation7 + $0x58] sm:$0xff] }
  0x10   :  { %344 = vmatpush.msra.mxu1 %v93_v7  ;;  %v107_v12 = vld [vmem:[#allocation7 + $0x160] sm:$0xff]  ;;  %325 = vmatpush.msra.mxu0 %v76_v6  ;;  %v106_v17 = vld [vmem:[#allocation7 + $0x158] sm:$0xff]  ;;  %v73_v20 = vld [vmem:[#allocation7 + $0x50] sm:$0xff] }
  0x11   :  { %384 = vmatpush.msra.mxu3 %v125_v9  ;;  %365 = vmatpush.msra.mxu2 %v108_v8  ;;  %v91_v14 = vld [vmem:[#allocation7 + $0xe0] sm:$0xff]  ;;  %v90_v18 = vld [vmem:[#allocation7 + $0xd8] sm:$0xff]  ;;  %v105_v21 = vld [vmem:[#allocation7 + $0x150] sm:$0xff] }
  0x12   :  { %v123_v15 = vld [vmem:[#allocation7 + $0x1e0] sm:$0xff]  ;;  %345 = vmatpush.msra.mxu1 %v92_v10  ;;  %326 = vmatpush.msra.mxu0 %v75_v11  ;;  %v122_v19 = vld [vmem:[#allocation7 + $0x1d8] sm:$0xff]  ;;  %v89_v22 = vld [vmem:[#allocation7 + $0xd0] sm:$0xff] }
  0x13   :  { %385 = vmatpush.msra.mxu3 %v124_v13  ;;  %366 = vmatpush.msra.mxu2 %v107_v12  ;;  %v121_v23 = vld [vmem:[#allocation7 + $0x1d0] sm:$0xff]  ;;  %v72_v24 = vld [vmem:[#allocation7 + $0x48] sm:$0xff]  ;;  %v71_v28 = vld [vmem:[#allocation7 + $0x40] sm:$0xff] }
  0x14   :  { %346 = vmatpush.msra.mxu1 %v91_v14  ;;  %327 = vmatpush.msra.mxu0 %v74_v16  ;;  %v104_v25 = vld [vmem:[#allocation7 + $0x148] sm:$0xff]  ;;  %v103_v29 = vld [vmem:[#allocation7 + $0x140] sm:$0xff]  ;;  %v70_v32 = vld [vmem:[#allocation7 + $0x38] sm:$0xff] }
  0x15   :  { %386 = vmatpush.msra.mxu3 %v123_v15  ;;  %367 = vmatpush.msra.mxu2 %v106_v17  ;;  %v88_v26 = vld [vmem:[#allocation7 + $0xc8] sm:$0xff]  ;;  %v87_v30 = vld [vmem:[#allocation7 + $0xc0] sm:$0xff]  ;;  %v102_v33 = vld [vmem:[#allocation7 + $0x138] sm:$0xff] }
  0x16   :  { %347 = vmatpush.msra.mxu1 %v90_v18  ;;  %328 = vmatpush.msra.mxu0 %v73_v20  ;;  %v120_v27 = vld [vmem:[#allocation7 + $0x1c8] sm:$0xff]  ;;  %v119_v31 = vld [vmem:[#allocation7 + $0x1c0] sm:$0xff]  ;;  %v86_v34 = vld [vmem:[#allocation7 + $0xb8] sm:$0xff] }
  0x17   :  { %387 = vmatpush.msra.mxu3 %v122_v19  ;;  %368 = vmatpush.msra.mxu2 %v105_v21  ;;  %v118_v35 = vld [vmem:[#allocation7 + $0x1b8] sm:$0xff]  ;;  %v69_v36 = vld [vmem:[#allocation7 + $0x30] sm:$0xff]  ;;  %v68_v40 = vld [vmem:[#allocation7 + $0x28] sm:$0xff] }
  0x18   :  { %348 = vmatpush.msra.mxu1 %v89_v22  ;;  %329 = vmatpush.msra.mxu0 %v72_v24  ;;  %v101_v37 = vld [vmem:[#allocation7 + $0x130] sm:$0xff]  ;;  %v100_v41 = vld [vmem:[#allocation7 + $0x128] sm:$0xff]  ;;  %v67_v44 = vld [vmem:[#allocation7 + $0x20] sm:$0xff] }
  0x19   :  { %388 = vmatpush.msra.mxu3 %v121_v23  ;;  %369 = vmatpush.msra.mxu2 %v104_v25  ;;  %v85_v38 = vld [vmem:[#allocation7 + $0xb0] sm:$0xff]  ;;  %v84_v42 = vld [vmem:[#allocation7 + $0xa8] sm:$0xff]  ;;  %v99_v45 = vld [vmem:[#allocation7 + $0x120] sm:$0xff] }
  0x1a   :  { %349 = vmatpush.msra.mxu1 %v88_v26  ;;  %330 = vmatpush.msra.mxu0 %v71_v28  ;;  %v117_v39 = vld [vmem:[#allocation7 + $0x1b0] sm:$0xff]  ;;  %v116_v43 = vld [vmem:[#allocation7 + $0x1a8] sm:$0xff]  ;;  %v83_v46 = vld [vmem:[#allocation7 + $0xa0] sm:$0xff] }
  0x1b   :  { %389 = vmatpush.msra.mxu3 %v120_v27  ;;  %370 = vmatpush.msra.mxu2 %v103_v29  ;;  %v115_v47 = vld [vmem:[#allocation7 + $0x1a0] sm:$0xff]  ;;  %v66_v48 = vld [vmem:[#allocation7 + $0x18] sm:$0xff]  ;;  %v65_v52 = vld [vmem:[#allocation7 + $0x10] sm:$0xff] }
  0x1c   :  { %350 = vmatpush.msra.mxu1 %v87_v30  ;;  %331 = vmatpush.msra.mxu0 %v70_v32  ;;  %v98_v49 = vld [vmem:[#allocation7 + $0x118] sm:$0xff]  ;;  %v97_v53 = vld [vmem:[#allocation7 + $0x110] sm:$0xff]  ;;  %v64_v56 = vld [vmem:[#allocation7 + $0x8] sm:$0xff] }
  0x1d   :  { %390 = vmatpush.msra.mxu3 %v119_v31  ;;  %371 = vmatpush.msra.mxu2 %v102_v33  ;;  %v82_v50 = vld [vmem:[#allocation7 + $0x98] sm:$0xff]  ;;  %v81_v54 = vld [vmem:[#allocation7 + $0x90] sm:$0xff]  ;;  %v96_v57 = vld [vmem:[#allocation7 + $0x108] sm:$0xff] }
  0x1e   :  { %351 = vmatpush.msra.mxu1 %v86_v34  ;;  %332 = vmatpush.msra.mxu0 %v69_v36  ;;  %v114_v51 = vld [vmem:[#allocation7 + $0x198] sm:$0xff]  ;;  %v113_v55 = vld [vmem:[#allocation7 + $0x190] sm:$0xff]  ;;  %v80_v58 = vld [vmem:[#allocation7 + $0x88] sm:$0xff] }
  0x1f   :  { %391 = vmatpush.msra.mxu3 %v118_v35  ;;  %372 = vmatpush.msra.mxu2 %v101_v37  ;;  %v112_v59 = vld [vmem:[#allocation7 + $0x188] sm:$0xff]  ;;  %v63_v60 = vld [vmem:[#allocation7] sm:$0xff]  ;;  %v142_v62 = vld [vmem:[#allocation7 + $0x278] sm:$0xff] }
  0x20   :  { %352 = vmatpush.msra.mxu1 %v85_v38  ;;  %333 = vmatpush.msra.mxu0 %v68_v40  ;;  %v95_v61 = vld [vmem:[#allocation7 + $0x100] sm:$0xff]  ;;  %v174_v63 = vld [vmem:[#allocation7 + $0x378] sm:$0xff]  ;;  %v141_v2 = vld [vmem:[#allocation7 + $0x270] sm:$0xff] }
  0x21   :  { %392 = vmatpush.msra.mxu3 %v117_v39  ;;  %373 = vmatpush.msra.mxu2 %v100_v41  ;;  %v79_v0 = vld [vmem:[#allocation7 + $0x80] sm:$0xff]  ;;  %v158_v3 = vld [vmem:[#allocation7 + $0x2f8] sm:$0xff]  ;;  %v173_v4 = vld [vmem:[#allocation7 + $0x370] sm:$0xff] }
  0x22   :  { %353 = vmatpush.msra.mxu1 %v84_v42  ;;  %334 = vmatpush.msra.mxu0 %v67_v44  ;;  %v111_v1 = vld [vmem:[#allocation7 + $0x180] sm:$0xff]  ;;  %v190_v5 = vld [vmem:[#allocation7 + $0x3f8] sm:$0xff]  ;;  %v140_v6 = vld [vmem:[#allocation7 + $0x268] sm:$0xff] }
  0x23   :  { %393 = vmatpush.msra.mxu3 %v116_v43  ;;  %374 = vmatpush.msra.mxu2 %v99_v45  ;;  %v157_v7 = vld [vmem:[#allocation7 + $0x2f0] sm:$0xff]  ;;  %v172_v8 = vld [vmem:[#allocation7 + $0x368] sm:$0xff]  ;;  %v139_v10 = vld [vmem:[#allocation7 + $0x260] sm:$0xff] }
  0x24   :  { %354 = vmatpush.msra.mxu1 %v83_v46  ;;  %335 = vmatpush.msra.mxu0 %v66_v48  ;;  %v189_v9 = vld [vmem:[#allocation7 + $0x3f0] sm:$0xff]  ;;  %v156_v11 = vld [vmem:[#allocation7 + $0x2e8] sm:$0xff]  ;;  %v171_v12 = vld [vmem:[#allocation7 + $0x360] sm:$0xff] }
  0x25   :  { %394 = vmatpush.msra.mxu3 %v115_v47  ;;  %375 = vmatpush.msra.mxu2 %v98_v49  ;;  %v188_v13 = vld [vmem:[#allocation7 + $0x3e8] sm:$0xff]  ;;  %v138_v14 = vld [vmem:[#allocation7 + $0x258] sm:$0xff]  ;;  %v155_v15 = vld [vmem:[#allocation7 + $0x2e0] sm:$0xff] }
  0x26   :  { %355 = vmatpush.msra.mxu1 %v82_v50  ;;  %336 = vmatpush.msra.mxu0 %v65_v52  ;;  %v170_v16 = vld [vmem:[#allocation7 + $0x358] sm:$0xff]  ;;  %v187_v17 = vld [vmem:[#allocation7 + $0x3e0] sm:$0xff]  ;;  %v137_v18 = vld [vmem:[#allocation7 + $0x250] sm:$0xff] }
  0x27   :  { %395 = vmatpush.msra.mxu3 %v114_v51  ;;  %376 = vmatpush.msra.mxu2 %v97_v53  ;;  %v154_v19 = vld [vmem:[#allocation7 + $0x2d8] sm:$0xff]  ;;  %v169_v20 = vld [vmem:[#allocation7 + $0x350] sm:$0xff]  ;;  %v136_v22 = vld [vmem:[#allocation7 + $0x248] sm:$0xff] }
  0x28   :  { %356 = vmatpush.msra.mxu1 %v81_v54  ;;  %337 = vmatpush.msra.mxu0 %v64_v56  ;;  %v186_v21 = vld [vmem:[#allocation7 + $0x3d8] sm:$0xff]  ;;  %v153_v23 = vld [vmem:[#allocation7 + $0x2d0] sm:$0xff]  ;;  %v168_v24 = vld [vmem:[#allocation7 + $0x348] sm:$0xff] }
  0x29   :  { %396 = vmatpush.msra.mxu3 %v113_v55  ;;  %377 = vmatpush.msra.mxu2 %v96_v57  ;;  %v185_v25 = vld [vmem:[#allocation7 + $0x3d0] sm:$0xff]  ;;  %v135_v26 = vld [vmem:[#allocation7 + $0x240] sm:$0xff]  ;;  %v152_v27 = vld [vmem:[#allocation7 + $0x2c8] sm:$0xff] }
  0x2a   :  { %357 = vmatpush.msra.mxu1 %v80_v58  ;;  %338 = vmatpush.msra.mxu0 %v63_v60  ;;  %v167_v28 = vld [vmem:[#allocation7 + $0x340] sm:$0xff]  ;;  %v184_v29 = vld [vmem:[#allocation7 + $0x3c8] sm:$0xff]  ;;  %v134_v30 = vld [vmem:[#allocation7 + $0x238] sm:$0xff] }
  0x2b   :  { %397 = vmatpush.msra.mxu3 %v112_v59  ;;  %378 = vmatpush.msra.mxu2 %v95_v61  ;;  %v151_v31 = vld [vmem:[#allocation7 + $0x2c0] sm:$0xff]  ;;  %v166_v32 = vld [vmem:[#allocation7 + $0x338] sm:$0xff]  ;;  %v133_v34 = vld [vmem:[#allocation7 + $0x230] sm:$0xff] }
  0x2c   :  { %403 = vmatpush.msrb.mxu0 %v142_v62  ;;  %358 = vmatpush.msra.mxu1 %v79_v0  ;;  %v183_v33 = vld [vmem:[#allocation7 + $0x3c0] sm:$0xff]  ;;  %v150_v35 = vld [vmem:[#allocation7 + $0x2b8] sm:$0xff]  ;;  %v165_v36 = vld [vmem:[#allocation7 + $0x330] sm:$0xff] }
  0x2d   :  { %443 = vmatpush.msrb.mxu2 %v174_v63  ;;  %398 = vmatpush.msra.mxu3 %v111_v1  ;;  %v182_v37 = vld [vmem:[#allocation7 + $0x3b8] sm:$0xff]  ;;  %v132_v38 = vld [vmem:[#allocation7 + $0x228] sm:$0xff]  ;;  %v149_v39 = vld [vmem:[#allocation7 + $0x2b0] sm:$0xff] }
  0x2e   :  { %404 = vmatpush.msrb.mxu0 %v141_v2  ;;  %423 = vmatpush.msrb.mxu1 %v158_v3  ;;  %v164_v40 = vld [vmem:[#allocation7 + $0x328] sm:$0xff]  ;;  %v181_v41 = vld [vmem:[#allocation7 + $0x3b0] sm:$0xff]  ;;  %v131_v42 = vld [vmem:[#allocation7 + $0x220] sm:$0xff] }
  0x2f   :  { %444 = vmatpush.msrb.mxu2 %v173_v4  ;;  %463 = vmatpush.msrb.mxu3 %v190_v5  ;;  %v148_v43 = vld [vmem:[#allocation7 + $0x2a8] sm:$0xff]  ;;  %v163_v44 = vld [vmem:[#allocation7 + $0x320] sm:$0xff]  ;;  %v130_v46 = vld [vmem:[#allocation7 + $0x218] sm:$0xff] }
  0x30   :  { %405 = vmatpush.msrb.mxu0 %v140_v6  ;;  %424 = vmatpush.msrb.mxu1 %v157_v7  ;;  %v180_v45 = vld [vmem:[#allocation7 + $0x3a8] sm:$0xff]  ;;  %v147_v47 = vld [vmem:[#allocation7 + $0x2a0] sm:$0xff]  ;;  %v162_v48 = vld [vmem:[#allocation7 + $0x318] sm:$0xff] }
  0x31   :  { %445 = vmatpush.msrb.mxu2 %v172_v8  ;;  %464 = vmatpush.msrb.mxu3 %v189_v9  ;;  %v179_v49 = vld [vmem:[#allocation7 + $0x3a0] sm:$0xff]  ;;  %v129_v50 = vld [vmem:[#allocation7 + $0x210] sm:$0xff]  ;;  %v146_v51 = vld [vmem:[#allocation7 + $0x298] sm:$0xff] }
  0x32   :  { %406 = vmatpush.msrb.mxu0 %v139_v10  ;;  %425 = vmatpush.msrb.mxu1 %v156_v11  ;;  %v161_v52 = vld [vmem:[#allocation7 + $0x310] sm:$0xff]  ;;  %v178_v53 = vld [vmem:[#allocation7 + $0x398] sm:$0xff]  ;;  %v128_v54 = vld [vmem:[#allocation7 + $0x208] sm:$0xff] }
  0x33   :  { %446 = vmatpush.msrb.mxu2 %v171_v12  ;;  %465 = vmatpush.msrb.mxu3 %v188_v13  ;;  %v145_v55 = vld [vmem:[#allocation7 + $0x290] sm:$0xff]  ;;  %v160_v56 = vld [vmem:[#allocation7 + $0x308] sm:$0xff]  ;;  %v127_v58 = vld [vmem:[#allocation7 + $0x200] sm:$0xff] }
  0x34   :  { %407 = vmatpush.msrb.mxu0 %v138_v14  ;;  %426 = vmatpush.msrb.mxu1 %v155_v15  ;;  %v177_v57 = vld [vmem:[#allocation7 + $0x390] sm:$0xff]  ;;  %v144_v59 = vld [vmem:[#allocation7 + $0x288] sm:$0xff]  ;;  %v159_v60 = vld [vmem:[#allocation7 + $0x300] sm:$0xff] }
  0x35   :  { %447 = vmatpush.msrb.mxu2 %v170_v16  ;;  %466 = vmatpush.msrb.mxu3 %v187_v17  ;;  %v176_v61 = vld [vmem:[#allocation7 + $0x388] sm:$0xff]  ;;  %v47_v62 = vld [vmem:[#allocation4] sm:$0xff]  ;;  %v49_v63 = vld [vmem:[#allocation4 + $0x10] sm:$0xff] }
  0x36   :  { %408 = vmatpush.msrb.mxu0 %v137_v18  ;;  %427 = vmatpush.msrb.mxu1 %v154_v19  ;;  %v206_v0 = vld [vmem:[#allocation7 + $0x478] sm:$0xff]  ;;  %v143_v2 = vld [vmem:[#allocation7 + $0x280] sm:$0xff]  ;;  %v48_v4 = vld [vmem:[#allocation4 + $0x8] sm:$0xff] }
  0x37   :  { %448 = vmatpush.msrb.mxu2 %v169_v20  ;;  %467 = vmatpush.msrb.mxu3 %v186_v21  ;;  %v238_v1 = vld [vmem:[#allocation7 + $0x578] sm:$0xff]  ;;  %v175_v3 = vld [vmem:[#allocation7 + $0x380] sm:$0xff]  ;;  %v205_v6 = vld [vmem:[#allocation7 + $0x470] sm:$0xff] }
  0x38   :  { %409 = vmatpush.msrb.mxu0 %v136_v22  ;;  %428 = vmatpush.msrb.mxu1 %v153_v23  ;;  %v50_v5 = vld [vmem:[#allocation4 + $0x18] sm:$0xff]  ;;  %v237_v8 = vld [vmem:[#allocation7 + $0x570] sm:$0xff]  ;;  %v204_v10 = vld [vmem:[#allocation7 + $0x468] sm:$0xff] }
  0x39   :  { %449 = vmatpush.msrb.mxu2 %v168_v24  ;;  %468 = vmatpush.msrb.mxu3 %v185_v25  ;;  %v222_v7 = vld [vmem:[#allocation7 + $0x4f8] sm:$0xff]  ;;  %v221_v11 = vld [vmem:[#allocation7 + $0x4f0] sm:$0xff]  ;;  %v236_v12 = vld [vmem:[#allocation7 + $0x568] sm:$0xff] }
  0x3a   :  { %410 = vmatpush.msrb.mxu0 %v135_v26  ;;  %429 = vmatpush.msrb.mxu1 %v152_v27  ;;  %v254_v9 = vld [vmem:[#allocation7 + $0x5f8] sm:$0xff]  ;;  %v253_v13 = vld [vmem:[#allocation7 + $0x5f0] sm:$0xff]  ;;  %v203_v14 = vld [vmem:[#allocation7 + $0x460] sm:$0xff] }
  0x3b   :  { %450 = vmatpush.msrb.mxu2 %v167_v28  ;;  %469 = vmatpush.msrb.mxu3 %v184_v29  ;;  %v220_v15 = vld [vmem:[#allocation7 + $0x4e8] sm:$0xff]  ;;  %v235_v16 = vld [vmem:[#allocation7 + $0x560] sm:$0xff]  ;;  %v53_v18 = vld [vmem:[#allocation4 + $0x30] sm:$0xff] }
  0x3c   :  { %411 = vmatpush.msrb.mxu0 %v134_v30  ;;  %430 = vmatpush.msrb.mxu1 %v151_v31  ;;  %v252_v17 = vld [vmem:[#allocation7 + $0x5e8] sm:$0xff]  ;;  %v202_v19 = vld [vmem:[#allocation7 + $0x458] sm:$0xff]  ;;  %v219_v20 = vld [vmem:[#allocation7 + $0x4e0] sm:$0xff] }
  0x3d   :  { %451 = vmatpush.msrb.mxu2 %v166_v32  ;;  %470 = vmatpush.msrb.mxu3 %v183_v33  ;;  %v234_v21 = vld [vmem:[#allocation7 + $0x558] sm:$0xff]  ;;  %v251_v22 = vld [vmem:[#allocation7 + $0x5e0] sm:$0xff]  ;;  %v201_v25 = vld [vmem:[#allocation7 + $0x450] sm:$0xff] }
  0x3e   :  { %412 = vmatpush.msrb.mxu0 %v133_v34  ;;  %431 = vmatpush.msrb.mxu1 %v150_v35  ;;  %v51_v23 = vld [vmem:[#allocation4 + $0x20] sm:$0xff]  ;;  %v54_v24 = vld [vmem:[#allocation4 + $0x38] sm:$0xff]  ;;  %v233_v27 = vld [vmem:[#allocation7 + $0x550] sm:$0xff] }
  0x3f   :  { %452 = vmatpush.msrb.mxu2 %v165_v36  ;;  %471 = vmatpush.msrb.mxu3 %v182_v37  ;;  %v218_v26 = vld [vmem:[#allocation7 + $0x4d8] sm:$0xff]  ;;  %v52_v29 = vld [vmem:[#allocation4 + $0x28] sm:$0xff]  ;;  %v217_v31 = vld [vmem:[#allocation7 + $0x4d0] sm:$0xff] }
  0x40   :  { %413 = vmatpush.msrb.mxu0 %v132_v38  ;;  %432 = vmatpush.msrb.mxu1 %v149_v39  ;;  %v250_v28 = vld [vmem:[#allocation7 + $0x5d8] sm:$0xff]  ;;  %v200_v30 = vld [vmem:[#allocation7 + $0x448] sm:$0xff]  ;;  %v249_v33 = vld [vmem:[#allocation7 + $0x5d0] sm:$0xff] }
  0x41   :  { %453 = vmatpush.msrb.mxu2 %v164_v40  ;;  %472 = vmatpush.msrb.mxu3 %v181_v41  ;;  %v232_v32 = vld [vmem:[#allocation7 + $0x548] sm:$0xff]  ;;  %v199_v34 = vld [vmem:[#allocation7 + $0x440] sm:$0xff]  ;;  %v198_v38 = vld [vmem:[#allocation7 + $0x438] sm:$0xff] }
  0x42   :  { %414 = vmatpush.msrb.mxu0 %v131_v42  ;;  %433 = vmatpush.msrb.mxu1 %v148_v43  ;;  %v216_v35 = vld [vmem:[#allocation7 + $0x4c8] sm:$0xff]  ;;  %v231_v36 = vld [vmem:[#allocation7 + $0x540] sm:$0xff]  ;;  %v230_v40 = vld [vmem:[#allocation7 + $0x538] sm:$0xff] }
  0x43   :  { %454 = vmatpush.msrb.mxu2 %v163_v44  ;;  %473 = vmatpush.msrb.mxu3 %v180_v45  ;;  %v248_v37 = vld [vmem:[#allocation7 + $0x5c8] sm:$0xff]  ;;  %v215_v39 = vld [vmem:[#allocation7 + $0x4c0] sm:$0xff]  ;;  %v197_v42 = vld [vmem:[#allocation7 + $0x430] sm:$0xff] }
  0x44   :  { %415 = vmatpush.msrb.mxu0 %v130_v46  ;;  %434 = vmatpush.msrb.mxu1 %v147_v47  ;;  %v247_v41 = vld [vmem:[#allocation7 + $0x5c0] sm:$0xff]  ;;  %v214_v43 = vld [vmem:[#allocation7 + $0x4b8] sm:$0xff]  ;;  %v229_v44 = vld [vmem:[#allocation7 + $0x530] sm:$0xff] }
  0x45   :  { %455 = vmatpush.msrb.mxu2 %v162_v48  ;;  %474 = vmatpush.msrb.mxu3 %v179_v49  ;;  %v246_v45 = vld [vmem:[#allocation7 + $0x5b8] sm:$0xff]  ;;  %v196_v46 = vld [vmem:[#allocation7 + $0x428] sm:$0xff]  ;;  %v213_v47 = vld [vmem:[#allocation7 + $0x4b0] sm:$0xff] }
  0x46   :  { %416 = vmatpush.msrb.mxu0 %v129_v50  ;;  %435 = vmatpush.msrb.mxu1 %v146_v51  ;;  %v228_v48 = vld [vmem:[#allocation7 + $0x528] sm:$0xff]  ;;  %v245_v49 = vld [vmem:[#allocation7 + $0x5b0] sm:$0xff]  ;;  %v195_v50 = vld [vmem:[#allocation7 + $0x420] sm:$0xff] }
  0x47   :  { %456 = vmatpush.msrb.mxu2 %v161_v52  ;;  %475 = vmatpush.msrb.mxu3 %v178_v53  ;;  %v212_v51 = vld [vmem:[#allocation7 + $0x4a8] sm:$0xff]  ;;  %v227_v52 = vld [vmem:[#allocation7 + $0x520] sm:$0xff] }
  0x48   :  { %417 = vmatpush.msrb.mxu0 %v128_v54  ;;  %436 = vmatpush.msrb.mxu1 %v145_v55  ;;  %v244_v53 = vld [vmem:[#allocation7 + $0x5a8] sm:$0xff]  ;;  %v194_v54 = vld [vmem:[#allocation7 + $0x418] sm:$0xff]  ;;  %v211_v55 = vld [vmem:[#allocation7 + $0x4a0] sm:$0xff] }
  0x49   :  { %457 = vmatpush.msrb.mxu2 %v160_v56  ;;  %476 = vmatpush.msrb.mxu3 %v177_v57  ;;  %v226_v56 = vld [vmem:[#allocation7 + $0x518] sm:$0xff]  ;;  %v243_v57 = vld [vmem:[#allocation7 + $0x5a0] sm:$0xff] }
  0x4a   :  { %418 = vmatpush.msrb.mxu0 %v127_v58  ;;  %437 = vmatpush.msrb.mxu1 %v144_v59  ;;  %v193_v58 = vld [vmem:[#allocation7 + $0x410] sm:$0xff]  ;;  %v210_v59 = vld [vmem:[#allocation7 + $0x498] sm:$0xff] }
  0x4b   :  { %458 = vmatpush.msrb.mxu2 %v159_v60  ;;  %477 = vmatpush.msrb.mxu3 %v176_v61  ;;  %v225_v60 = vld [vmem:[#allocation7 + $0x510] sm:$0xff]  ;;  %v242_v61 = vld [vmem:[#allocation7 + $0x598] sm:$0xff] }
  0x4c   :  { %339 = vmatmul.f32.vlgmr.msra.gmra.mxu0 %v47_v62  ;;  %379 = vmatmul.f32.vlgmr.msra.gmra.mxu2 %v49_v63  ;;  %v192_v62 = vld [vmem:[#allocation7 + $0x408] sm:$0xff]  ;;  %v209_v63 = vld [vmem:[#allocation7 + $0x490] sm:$0xff] }
  0x4d   :  { %483 = vmatpush.msra.mxu0 %v206_v0  ;;  %523 = vmatpush.msra.mxu2 %v238_v1  ;;  %v224_v0 = vld [vmem:[#allocation7 + $0x508] sm:$0xff]  ;;  %v241_v1 = vld [vmem:[#allocation7 + $0x590] sm:$0xff] }
  0x4e   :  { %438 = vmatpush.msrb.mxu1 %v143_v2  ;;  %478 = vmatpush.msrb.mxu3 %v175_v3  ;;  %v191_v2 = vld [vmem:[#allocation7 + $0x400] sm:$0xff]  ;;  %v208_v3 = vld [vmem:[#allocation7 + $0x488] sm:$0xff] }
  0x4f   :  { %359 = vmatmul.f32.vlgmr.msra.gmra.mxu1 %v48_v4  ;;  %399 = vmatmul.f32.vlgmr.msra.gmra.mxu3 %v50_v5  ;;  %v223_v4 = vld [vmem:[#allocation7 + $0x500] sm:$0xff]  ;;  %v240_v5 = vld [vmem:[#allocation7 + $0x588] sm:$0xff] }
  0x50   :  { %484 = vmatpush.msra.mxu0 %v205_v6  ;;  %503 = vmatpush.msra.mxu1 %v222_v7  ;;  %v55_v6 = vld [vmem:[#allocation4 + $0x40] sm:$0xff]  ;;  %v57_v7 = vld [vmem:[#allocation4 + $0x50] sm:$0xff] }
  0x51   :  { %524 = vmatpush.msra.mxu2 %v237_v8  ;;  %543 = vmatpush.msra.mxu3 %v254_v9  ;;  %v270_v8 = vld [vmem:[#allocation7 + $0x678] sm:$0xff] }
  0x52   :  { %485 = vmatpush.msra.mxu0 %v204_v10  ;;  %504 = vmatpush.msra.mxu1 %v221_v11  ;;  %v302_v9 = vld [vmem:[#allocation7 + $0x778] sm:$0xff]  ;;  %v207_v10 = vld [vmem:[#allocation7 + $0x480] sm:$0xff] }
  0x53   :  { %525 = vmatpush.msra.mxu2 %v236_v12  ;;  %544 = vmatpush.msra.mxu3 %v253_v13  ;;  %v239_v11 = vld [vmem:[#allocation7 + $0x580] sm:$0xff]  ;;  %v56_v12 = vld [vmem:[#allocation4 + $0x48] sm:$0xff]  ;;  %v58_v13 = vld [vmem:[#allocation4 + $0x58] sm:$0xff] }
  0x54   :  { %486 = vmatpush.msra.mxu0 %v203_v14  ;;  %505 = vmatpush.msra.mxu1 %v220_v15  ;;  %v269_v14 = vld [vmem:[#allocation7 + $0x670] sm:$0xff]  ;;  %v286_v15 = vld [vmem:[#allocation7 + $0x6f8] sm:$0xff] }
  0x55   :  { %526 = vmatpush.msra.mxu2 %v235_v16  ;;  %545 = vmatpush.msra.mxu3 %v252_v17  ;;  %v301_v16 = vld [vmem:[#allocation7 + $0x770] sm:$0xff]  ;;  %v318_v17 = vld [vmem:[#allocation7 + $0x7f8] sm:$0xff] }
  0x56   :  { %459 = vmatmul.f32.vlgmr.msrb.gmra.mxu2 %v53_v18  ;;  %487 = vmatpush.msra.mxu0 %v202_v19  ;;  %v268_v18 = vld [vmem:[#allocation7 + $0x668] sm:$0xff]  ;;  %v285_v19 = vld [vmem:[#allocation7 + $0x6f0] sm:$0xff] }
  0x57   :  { %506 = vmatpush.msra.mxu1 %v219_v20  ;;  %527 = vmatpush.msra.mxu2 %v234_v21  ;;  %v300_v20 = vld [vmem:[#allocation7 + $0x768] sm:$0xff]  ;;  %v317_v21 = vld [vmem:[#allocation7 + $0x7f0] sm:$0xff] }
  0x58   :  { %546 = vmatpush.msra.mxu3 %v251_v22  ;;  %419 = vmatmul.f32.vlgmr.msrb.gmra.mxu0 %v51_v23  ;;  %v267_v22 = vld [vmem:[#allocation7 + $0x660] sm:$0xff]  ;;  %v284_v23 = vld [vmem:[#allocation7 + $0x6e8] sm:$0xff] }
  0x59   :  { %479 = vmatmul.f32.vlgmr.msrb.gmra.mxu3 %v54_v24  ;;  %488 = vmatpush.msra.mxu0 %v201_v25  ;;  %v299_v24 = vld [vmem:[#allocation7 + $0x760] sm:$0xff]  ;;  %v316_v25 = vld [vmem:[#allocation7 + $0x7e8] sm:$0xff] }
  0x5a   :  { %507 = vmatpush.msra.mxu1 %v218_v26  ;;  %528 = vmatpush.msra.mxu2 %v233_v27  ;;  %v266_v26 = vld [vmem:[#allocation7 + $0x658] sm:$0xff]  ;;  %v283_v27 = vld [vmem:[#allocation7 + $0x6e0] sm:$0xff] }
  0x5b   :  { %547 = vmatpush.msra.mxu3 %v250_v28  ;;  %439 = vmatmul.f32.vlgmr.msrb.gmra.mxu1 %v52_v29  ;;  %v298_v28 = vld [vmem:[#allocation7 + $0x758] sm:$0xff]  ;;  %v315_v29 = vld [vmem:[#allocation7 + $0x7e0] sm:$0xff] }
  0x5c   :  { %489 = vmatpush.msra.mxu0 %v200_v30  ;;  %508 = vmatpush.msra.mxu1 %v217_v31  ;;  %v265_v30 = vld [vmem:[#allocation7 + $0x650] sm:$0xff]  ;;  %v282_v31 = vld [vmem:[#allocation7 + $0x6d8] sm:$0xff] }
  0x5d   :  { %529 = vmatpush.msra.mxu2 %v232_v32  ;;  %548 = vmatpush.msra.mxu3 %v249_v33  ;;  %v297_v32 = vld [vmem:[#allocation7 + $0x750] sm:$0xff]  ;;  %v314_v33 = vld [vmem:[#allocation7 + $0x7d8] sm:$0xff] }
  0x5e   :  { %490 = vmatpush.msra.mxu0 %v199_v34  ;;  %509 = vmatpush.msra.mxu1 %v216_v35  ;;  %v264_v34 = vld [vmem:[#allocation7 + $0x648] sm:$0xff]  ;;  %v281_v35 = vld [vmem:[#allocation7 + $0x6d0] sm:$0xff] }
  0x5f   :  { %530 = vmatpush.msra.mxu2 %v231_v36  ;;  %549 = vmatpush.msra.mxu3 %v248_v37  ;;  %v296_v36 = vld [vmem:[#allocation7 + $0x748] sm:$0xff]  ;;  %v313_v37 = vld [vmem:[#allocation7 + $0x7d0] sm:$0xff] }
  0x60   :  { %491 = vmatpush.msra.mxu0 %v198_v38  ;;  %510 = vmatpush.msra.mxu1 %v215_v39  ;;  %v263_v38 = vld [vmem:[#allocation7 + $0x640] sm:$0xff]  ;;  %v280_v39 = vld [vmem:[#allocation7 + $0x6c8] sm:$0xff] }
  0x61   :  { %531 = vmatpush.msra.mxu2 %v230_v40  ;;  %550 = vmatpush.msra.mxu3 %v247_v41  ;;  %v295_v40 = vld [vmem:[#allocation7 + $0x740] sm:$0xff]  ;;  %v312_v41 = vld [vmem:[#allocation7 + $0x7c8] sm:$0xff] }
  0x62   :  { %492 = vmatpush.msra.mxu0 %v197_v42  ;;  %511 = vmatpush.msra.mxu1 %v214_v43  ;;  %v262_v42 = vld [vmem:[#allocation7 + $0x638] sm:$0xff]  ;;  %v279_v43 = vld [vmem:[#allocation7 + $0x6c0] sm:$0xff] }
  0x63   :  { %532 = vmatpush.msra.mxu2 %v229_v44  ;;  %551 = vmatpush.msra.mxu3 %v246_v45  ;;  %v294_v44 = vld [vmem:[#allocation7 + $0x738] sm:$0xff]  ;;  %v311_v45 = vld [vmem:[#allocation7 + $0x7c0] sm:$0xff] }
  0x64   :  { %493 = vmatpush.msra.mxu0 %v196_v46  ;;  %512 = vmatpush.msra.mxu1 %v213_v47  ;;  %v261_v46 = vld [vmem:[#allocation7 + $0x630] sm:$0xff]  ;;  %v278_v47 = vld [vmem:[#allocation7 + $0x6b8] sm:$0xff] }
  0x65   :  { %533 = vmatpush.msra.mxu2 %v228_v48  ;;  %552 = vmatpush.msra.mxu3 %v245_v49  ;;  %v293_v48 = vld [vmem:[#allocation7 + $0x730] sm:$0xff]  ;;  %v310_v49 = vld [vmem:[#allocation7 + $0x7b8] sm:$0xff] }
  0x66   :  { %494 = vmatpush.msra.mxu0 %v195_v50  ;;  %513 = vmatpush.msra.mxu1 %v212_v51  ;;  %v260_v50 = vld [vmem:[#allocation7 + $0x628] sm:$0xff]  ;;  %v277_v51 = vld [vmem:[#allocation7 + $0x6b0] sm:$0xff] }
  0x67   :  { %534 = vmatpush.msra.mxu2 %v227_v52  ;;  %553 = vmatpush.msra.mxu3 %v244_v53  ;;  %v292_v52 = vld [vmem:[#allocation7 + $0x728] sm:$0xff]  ;;  %v309_v53 = vld [vmem:[#allocation7 + $0x7b0] sm:$0xff] }
  0x68   :  { %495 = vmatpush.msra.mxu0 %v194_v54  ;;  %514 = vmatpush.msra.mxu1 %v211_v55  ;;  %v259_v54 = vld [vmem:[#allocation7 + $0x620] sm:$0xff]  ;;  %v276_v55 = vld [vmem:[#allocation7 + $0x6a8] sm:$0xff] }
  0x69   :  { %535 = vmatpush.msra.mxu2 %v226_v56  ;;  %554 = vmatpush.msra.mxu3 %v243_v57  ;;  %v291_v56 = vld [vmem:[#allocation7 + $0x720] sm:$0xff]  ;;  %v308_v57 = vld [vmem:[#allocation7 + $0x7a8] sm:$0xff] }
  0x6a   :  { %496 = vmatpush.msra.mxu0 %v193_v58  ;;  %515 = vmatpush.msra.mxu1 %v210_v59  ;;  %v258_v58 = vld [vmem:[#allocation7 + $0x618] sm:$0xff]  ;;  %v275_v59 = vld [vmem:[#allocation7 + $0x6a0] sm:$0xff] }
  0x6b   :  { %536 = vmatpush.msra.mxu2 %v225_v60  ;;  %555 = vmatpush.msra.mxu3 %v242_v61  ;;  %v290_v60 = vld [vmem:[#allocation7 + $0x718] sm:$0xff]  ;;  %v307_v61 = vld [vmem:[#allocation7 + $0x7a0] sm:$0xff] }
  0x6c   :  { %497 = vmatpush.msra.mxu0 %v192_v62  ;;  %516 = vmatpush.msra.mxu1 %v209_v63  ;;  %v257_v62 = vld [vmem:[#allocation7 + $0x610] sm:$0xff]  ;;  %v274_v63 = vld [vmem:[#allocation7 + $0x698] sm:$0xff] }
  0x6d   :  { %537 = vmatpush.msra.mxu2 %v224_v0  ;;  %556 = vmatpush.msra.mxu3 %v241_v1  ;;  %v289_v0 = vld [vmem:[#allocation7 + $0x710] sm:$0xff]  ;;  %v306_v1 = vld [vmem:[#allocation7 + $0x798] sm:$0xff] }
  0x6e   :  { %498 = vmatpush.msra.mxu0 %v191_v2  ;;  %517 = vmatpush.msra.mxu1 %v208_v3  ;;  %v256_v2 = vld [vmem:[#allocation7 + $0x608] sm:$0xff]  ;;  %v273_v3 = vld [vmem:[#allocation7 + $0x690] sm:$0xff] }
  0x6f   :  { %538 = vmatpush.msra.mxu2 %v223_v4  ;;  %557 = vmatpush.msra.mxu3 %v240_v5  ;;  %v288_v4 = vld [vmem:[#allocation7 + $0x708] sm:$0xff]  ;;  %v305_v5 = vld [vmem:[#allocation7 + $0x790] sm:$0xff] }
  0x70   :  { %499 = vmatmul.f32.vlgmr.msra.gmra.mxu0 %v55_v6  ;;  %539 = vmatmul.f32.vlgmr.msra.gmra.mxu2 %v57_v7  ;;  %v255_v6 = vld [vmem:[#allocation7 + $0x600] sm:$0xff]  ;;  %v272_v7 = vld [vmem:[#allocation7 + $0x688] sm:$0xff] }
  0x71   :  { %563 = vmatpush.msrb.mxu0 %v270_v8  ;;  %603 = vmatpush.msrb.mxu2 %v302_v9  ;;  %v287_v8 = vld [vmem:[#allocation7 + $0x700] sm:$0xff]  ;;  %v304_v9 = vld [vmem:[#allocation7 + $0x788] sm:$0xff] }
  0x72   :  { %518 = vmatpush.msra.mxu1 %v207_v10  ;;  %558 = vmatpush.msra.mxu3 %v239_v11  ;;  %v59_v10 = vld [vmem:[#allocation4 + $0x60] sm:$0xff]  ;;  %v61_v11 = vld [vmem:[#allocation4 + $0x70] sm:$0xff] }
  0x73   :  { %519 = vmatmul.f32.vlgmr.msra.gmra.mxu1 %v56_v12  ;;  %559 = vmatmul.f32.vlgmr.msra.gmra.mxu3 %v58_v13  ;;  %v271_v12 = vld [vmem:[#allocation7 + $0x680] sm:$0xff] }
  0x74   :  { %564 = vmatpush.msrb.mxu0 %v269_v14  ;;  %583 = vmatpush.msrb.mxu1 %v286_v15  ;;  %v303_v13 = vld [vmem:[#allocation7 + $0x780] sm:$0xff]  ;;  %v60_v14 = vld [vmem:[#allocation4 + $0x68] sm:$0xff]  ;;  %v62_v15 = vld [vmem:[#allocation4 + $0x78] sm:$0xff] }
  0x75   :  { %604 = vmatpush.msrb.mxu2 %v301_v16  ;;  %623 = vmatpush.msrb.mxu3 %v318_v17  ;;  %v667_v16 = vld [vmem:[%s791_s3] ss:$0 sm:$0xff]  ;;  %s750_s3 = smov [#allocation9]  }
  0x76   :  { %565 = vmatpush.msrb.mxu0 %v268_v18  ;;  %584 = vmatpush.msrb.mxu1 %v285_v19  ;;  %s649_s26 = sshll.u32 %s750_s3, 4  ;;  %s650_s26 = int_to_ptr.vmem [resolvable:$true] %s649_s26 }
  0x77   :  { %605 = vmatpush.msrb.mxu2 %v300_v20  ;;  %624 = vmatpush.msrb.mxu3 %v317_v21 }
  0x78   :  { %566 = vmatpush.msrb.mxu0 %v267_v22  ;;  %585 = vmatpush.msrb.mxu1 %v284_v23 }
  0x79   :  { %606 = vmatpush.msrb.mxu2 %v299_v24  ;;  %625 = vmatpush.msrb.mxu3 %v316_v25 }
  0x7a   :  { %567 = vmatpush.msrb.mxu0 %v266_v26  ;;  %586 = vmatpush.msrb.mxu1 %v283_v27 }
  0x7b   :  { %607 = vmatpush.msrb.mxu2 %v298_v28  ;;  %626 = vmatpush.msrb.mxu3 %v315_v29 }
  0x7c   :  { %568 = vmatpush.msrb.mxu0 %v265_v30  ;;  %587 = vmatpush.msrb.mxu1 %v282_v31 }
  0x7d   :  { %608 = vmatpush.msrb.mxu2 %v297_v32  ;;  %627 = vmatpush.msrb.mxu3 %v314_v33 }
  0x7e   :  { %569 = vmatpush.msrb.mxu0 %v264_v34  ;;  %588 = vmatpush.msrb.mxu1 %v281_v35 }
  0x7f   :  { %609 = vmatpush.msrb.mxu2 %v296_v36  ;;  %628 = vmatpush.msrb.mxu3 %v313_v37 }
  0x80   :  { %570 = vmatpush.msrb.mxu0 %v263_v38  ;;  %589 = vmatpush.msrb.mxu1 %v280_v39 }
  0x81   :  { %610 = vmatpush.msrb.mxu2 %v295_v40  ;;  %629 = vmatpush.msrb.mxu3 %v312_v41 }
  0x82   :  { %571 = vmatpush.msrb.mxu0 %v262_v42  ;;  %590 = vmatpush.msrb.mxu1 %v279_v43 }
  0x83   :  { %611 = vmatpush.msrb.mxu2 %v294_v44  ;;  %630 = vmatpush.msrb.mxu3 %v311_v45 }
  0x84   :  { %572 = vmatpush.msrb.mxu0 %v261_v46  ;;  %591 = vmatpush.msrb.mxu1 %v278_v47 }
  0x85   :  { %612 = vmatpush.msrb.mxu2 %v293_v48  ;;  %631 = vmatpush.msrb.mxu3 %v310_v49 }
  0x86   :  { %573 = vmatpush.msrb.mxu0 %v260_v50  ;;  %592 = vmatpush.msrb.mxu1 %v277_v51 }
  0x87   :  { %613 = vmatpush.msrb.mxu2 %v292_v52  ;;  %632 = vmatpush.msrb.mxu3 %v309_v53 }
  0x88   :  { %574 = vmatpush.msrb.mxu0 %v259_v54  ;;  %593 = vmatpush.msrb.mxu1 %v276_v55 }
  0x89   :  { %614 = vmatpush.msrb.mxu2 %v291_v56  ;;  %633 = vmatpush.msrb.mxu3 %v308_v57 }
  0x8a   :  { %575 = vmatpush.msrb.mxu0 %v258_v58  ;;  %594 = vmatpush.msrb.mxu1 %v275_v59 }
  0x8b   :  { %615 = vmatpush.msrb.mxu2 %v290_v60  ;;  %634 = vmatpush.msrb.mxu3 %v307_v61 }
  0x8c   :  { %576 = vmatpush.msrb.mxu0 %v257_v62  ;;  %595 = vmatpush.msrb.mxu1 %v274_v63 }
  0x8d   :  { %616 = vmatpush.msrb.mxu2 %v289_v0  ;;  %635 = vmatpush.msrb.mxu3 %v306_v1 }
  0x8e   :  { %577 = vmatpush.msrb.mxu0 %v256_v2  ;;  %596 = vmatpush.msrb.mxu1 %v273_v3 }
  0x8f   :  { %617 = vmatpush.msrb.mxu2 %v288_v4  ;;  %636 = vmatpush.msrb.mxu3 %v305_v5 }
  0x90   :  { %578 = vmatpush.msrb.mxu0 %v255_v6  ;;  %597 = vmatpush.msrb.mxu1 %v272_v7 }
  0x91   :  { %618 = vmatpush.msrb.mxu2 %v287_v8  ;;  %637 = vmatpush.msrb.mxu3 %v304_v9 }
  0x92   :  { %579 = vmatmul.f32.vlgmr.msrb.gmra.mxu0 %v59_v10  ;;  %619 = vmatmul.f32.vlgmr.msrb.gmra.mxu2 %v61_v11 }
  0x93   :  { %598 = vmatpush.msrb.mxu1 %v271_v12  ;;  %638 = vmatpush.msrb.mxu3 %v303_v13 }
  0x94   :  { %599 = vmatmul.f32.vlgmr.msrb.gmra.mxu1 %v60_v14  ;;  %639 = vmatmul.f32.vlgmr.msrb.gmra.mxu3 %v62_v15 }
  0xc9   :  { %v340_v17 = vpop.f32.mrf.mxu0 }
  0xca   :  { %v341_v18 = vadd.f32 %v667_v16, %v340_v17 }
  0xcc   :  { %v360_v19 = vpop.f32.mrf.mxu1 }
  0xcd   :  { %v361_v20 = vadd.f32 %v360_v19, %v341_v18 }
  0xcf   :  { %v380_v21 = vpop.f32.mrf.mxu2 }
  0xd0   :  { %v381_v22 = vadd.f32 %v380_v21, %v361_v20 }
  0xd2   :  { %v400_v23 = vpop.f32.mrf.mxu3 }
  0xd3   :  { %v401_v24 = vadd.f32 %v400_v23, %v381_v22 }
  0xd5   :  { %v420_v25 = vpop.f32.mrf.mxu0 }
  0xd6   :  { %v421_v26 = vadd.f32 %v420_v25, %v401_v24 }
  0xd8   :  { %v440_v27 = vpop.f32.mrf.mxu1 }
  0xd9   :  { %v441_v28 = vadd.f32 %v440_v27, %v421_v26  ;;  %v460_v29 = vpop.f32.mrf.mxu2 }
  0xdb   :  { %v461_v30 = vadd.f32 %v460_v29, %v441_v28 }
  0xdc   :  { %v480_v31 = vpop.f32.mrf.mxu3 }
  0xdd   :  { %v481_v33 = vadd.f32 %v480_v31, %v461_v30 }
  0xed   :  { %v500_v32 = vpop.f32.mrf.mxu0 }
  0xee   :  { %v501_v34 = vadd.f32 %v500_v32, %v481_v33 }
  0xf0   :  { %v520_v35 = vpop.f32.mrf.mxu1 }
  0xf1   :  { %v521_v37 = vadd.f32 %v520_v35, %v501_v34 }
  0xf3   :  { %v540_v36 = vpop.f32.mrf.mxu2 }
  0xf4   :  { %v541_v38 = vadd.f32 %v540_v36, %v521_v37 }
  0xf6   :  { %v560_v39 = vpop.f32.mrf.mxu3 }
  0xf7   :  { %v561_v40 = vadd.f32 %v560_v39, %v541_v38 }
 0x10f   :  { %v580_v41 = vpop.f32.mrf.mxu0 }
 0x110   :  { %v581_v42 = vadd.f32 %v580_v41, %v561_v40 }
 0x111   :  { %v600_v43 = vpop.f32.mrf.mxu1 }
 0x112   :  { %v601_v44 = vadd.f32 %v600_v43, %v581_v42 }
 0x115   :  { %v620_v45 = vpop.f32.mrf.mxu2 }
 0x116   :  { %v621_v46 = vadd.f32 %v620_v45, %v601_v44 }
 0x117   :  { %v640_v47 = vpop.f32.mrf.mxu3 }
 0x118   :  { %v641_v48 = vadd.f32 %v640_v47, %v621_v46 }
 0x11a   :  { %643 = vst [vmem:[#allocation9] sm:$0xff] %v641_v48 }
 0x11b   :  { %654 = dma.vmem_to_hbm [thread:$0]  %s650_s26, 128, %s652_s29, [#allocation6]  }
 0x11c   :  { %744 = dma.done.wait [#allocation6], 128  }
 0x11d   :  { %745 = vsyncadd [#allocation6], 4294967168 }
 0x11e   :  { %659 = vsyncpa [#allocation5], 1 }
 0x11f   :  { %660 = vsyncpa [#allocation8], 1 }
 0x120   :  { %661 = vsyncpa [#allocation6], 1 }

</bundles_post_ra>
